<compile_context>
chip_gen: v5e
topology: v5e:2x2
jax: 0.10.0
libtpu: 0.0.40
codegen_flags: <defaults>
</compile_context>

<pallas_src>
import jax
import jax.numpy as jnp
from jax.experimental import pallas as pl
from jax.experimental.pallas import tpu as pltpu

LANE = 512          # lane-dense last dim (multiple of 128)
BLOCK_ROWS = 1024   # rows per grid step: 1024*512*4B = 2 MiB per buffer


# --------------------------------- kernel ------------------------------------
def star_relu_kernel(x_ref, scale_ref, bias_ref, o_ref):
    # x_ref     : (block_rows, LANE) tile of the flattened input (VMEM)
    # scale_ref : (1,) f32 in SMEM
    # bias_ref  : (1,) f32 in SMEM
    # o_ref     : (block_rows, LANE)
    x = x_ref[...]
    r = jnp.maximum(x, jnp.zeros_like(x))          # ReLU on the VPU
    y = scale_ref[0] * (r * r) + bias_ref[0]       # scale*relu(x)^2 + bias
    o_ref[...] = y.astype(o_ref.dtype)


def _star_relu_2d(x2, scale, bias, block_rows):
    rows, cols = x2.shape
    grid = (rows // block_rows,)
    return pl.pallas_call(
        star_relu_kernel,
        out_shape=jax.ShapeDtypeStruct((rows, cols), x2.dtype),
        grid_spec=pltpu.PrefetchScalarGridSpec(
            num_scalar_prefetch=0,
            grid=grid,
            in_specs=[
                pl.BlockSpec((block_rows, cols), lambda i: (i, 0)),
                pl.BlockSpec(memory_space=pltpu.MemorySpace.SMEM),
                pl.BlockSpec(memory_space=pltpu.MemorySpace.SMEM),
            ],
            out_specs=pl.BlockSpec((block_rows, cols), lambda i: (i, 0)),
        ),
        compiler_params=pltpu.CompilerParams(
            dimension_semantics=("parallel",)),
    )(x2, scale, bias)


# ------------------------------ JAX-side glue ---------------------------------
def star_relu_forward(x, scale, bias):
    """StarReLU forward.  x: any shape; scale, bias: shape-(1,) parameters."""
    orig_shape = x.shape
    n = int(x.size)

    # Flatten and pad into a lane-dense (rows, LANE) slab.
    cols = LANE
    rows = -(-n // cols)  # ceil
    if rows <= BLOCK_ROWS:
        rows_p = max(8, ((rows + 7) // 8) * 8)     # single block = full array
        br = rows_p
    else:
        rows_p = ((rows + BLOCK_ROWS - 1) // BLOCK_ROWS) * BLOCK_ROWS
        br = BLOCK_ROWS

    flat = x.reshape(-1)
    pad = rows_p * cols - n
    if pad:
        flat = jnp.pad(flat, (0, pad))
    x2 = flat.reshape(rows_p, cols)

    out2 = _star_relu_2d(x2, scale, bias, br)

    return out2.reshape(-1)[:n].reshape(orig_shape)


# ------------------------------ pure-JAX reference -----------------------------
def star_relu_reference(x, scale, bias):
    return scale[0] * jnp.maximum(x, 0.0) ** 2 + bias[0]


# ----------------------------------- main -------------------------------------
if __name__ == "__main__":
    key = jax.random.PRNGKey(0)

    # input: NCHW-ish activation tensor, batch=2, channels=4, spatial 16x16
    x = jax.random.normal(key, (2, 4, 16, 16), dtype=jnp.float32)

    # StarReLU default (non-learnable) parameters
    scale = jnp.full((1,), 0.8944, dtype=jnp.float32)
    bias = jnp.full((1,), -0.4472, dtype=jnp.float32)

    out = star_relu_forward(x, scale, bias)
    out = jax.block_until_ready(out)

    ref = star_relu_reference(x, scale, bias)
    assert out.shape == x.shape
    assert out.dtype == x.dtype
    assert jnp.allclose(out, ref, atol=1e-6, rtol=1e-6), "mismatch vs reference"

    print("KERNEL_OK")
</pallas_src>

<mosaic_0001>
module attributes {stable_mosaic.version = 11 : i64} {
  func.func @star_relu_kernel(%arg0: i32, %arg1: memref<8x512xf32, #tpu.memory_space<vmem>>, %arg2: memref<1xf32, #tpu.memory_space<smem>>, %arg3: memref<1xf32, #tpu.memory_space<smem>>, %arg4: memref<8x512xf32, #tpu.memory_space<vmem>>) attributes {dimension_semantics = [#tpu.dimension_semantics<parallel>], iteration_bounds = array<i64: 1>, scalar_prefetch = 0 : i64, scratch_operands = 0 : i64, tpu.core_type = #tpu.core_type<tc>, window_params = [{transform_indices = @transform_0, window_bounds = array<i64: 8, 512>}, {transform_indices = @transform_1, window_bounds = array<i64: 1>}, {transform_indices = @transform_2, window_bounds = array<i64: 1>}, {transform_indices = @transform_3, window_bounds = array<i64: 8, 512>}]} {
    %c0 = arith.constant 0 : index
    %c0_0 = arith.constant 0 : index
    %0 = vector.load %arg1[%c0, %c0_0] : memref<8x512xf32, #tpu.memory_space<vmem>>, vector<8x512xf32>
    %cst = arith.constant 0.000000e+00 : f32
    %1 = vector.broadcast %cst : f32 to vector<8x512xf32>
    %2 = arith.maximumf %0, %1 : vector<8x512xf32>
    %c0_1 = arith.constant 0 : index
    %3 = memref.load %arg2[%c0_1] : memref<1xf32, #tpu.memory_space<smem>>
    %4 = arith.mulf %2, %2 : vector<8x512xf32>
    %5 = vector.broadcast %3 : f32 to vector<8x512xf32>
    %6 = arith.mulf %5, %4 : vector<8x512xf32>
    %c0_2 = arith.constant 0 : index
    %7 = memref.load %arg3[%c0_2] : memref<1xf32, #tpu.memory_space<smem>>
    %8 = vector.broadcast %7 : f32 to vector<8x512xf32>
    %9 = arith.addf %6, %8 : vector<8x512xf32>
    %c0_3 = arith.constant 0 : index
    %c0_4 = arith.constant 0 : index
    %10 = vector.load %arg4[%c0_3, %c0_4] : memref<8x512xf32, #tpu.memory_space<vmem>>, vector<8x512xf32>
    tpu.vector_store %arg4[%c0_3, %c0_4], %9 {strides = array<i32>} : memref<8x512xf32, #tpu.memory_space<vmem>>, vector<8x512xf32>,
    return
  }
  func.func @transform_0(%arg0: i32) -> (i32, i32) {
    %c0_i32 = arith.constant 0 : i32
    %c0_i32_0 = arith.constant 0 : i32
    return %arg0, %c0_i32 : i32, i32
  }
  func.func @transform_1(%arg0: i32) -> i32 {
    %c0_i32 = arith.constant 0 : i32
    %c0_i32_0 = arith.constant 0 : i32
    return %c0_i32 : i32
  }
  func.func @transform_2(%arg0: i32) -> i32 {
    %c0_i32 = arith.constant 0 : i32
    %c0_i32_0 = arith.constant 0 : i32
    return %c0_i32 : i32
  }
  func.func @transform_3(%arg0: i32) -> (i32, i32) {
    %c0_i32 = arith.constant 0 : i32
    %c0_i32_0 = arith.constant 0 : i32
    return %arg0, %c0_i32 : i32, i32
  }
}

</mosaic_0001>

<bundles_post_ra>
// kernel: tpu_custom_call.1
= control target key start
LH: loop header
LB: loop body
LE: loop exit
PB: predicated region body
PF: predicated region fallthrough
CT: control target
= control target key end

     0   :  { %10 = vsyncpa [#allocation5], 0  ;;  %s164_s0 = inlined_call_operand.hbm [shape: f32[8,512], index: 0, kind: input, shape index: {}]   ;;  %s165_s1 = inlined_call_operand.<no memory space> [shape: f32[1], index: 1, kind: input, shape index: {}]   ;;  %s166_s2 = inlined_call_operand.<no memory space> [shape: f32[1], index: 2, kind: input, shape index: {}]   ;;  %s167_s3 = inlined_call_operand.hbm [shape: f32[8,512], index: 3, kind: output, shape index: {}]  }
   0x1   :  { %11 = vsyncpa [#allocation6], 0  ;;  %s17_s14 = sshll.u32 %s164_s0, 4  ;;  %s130_s15 = smov [#allocation4]   ;;  %s18_s14 = int_to_ptr.hbm [resolvable:$true] %s17_s14 }
   0x2   :  { %s19_s16 = sshll.u32 %s130_s15, 4  ;;  %s20_s16 = int_to_ptr.vmem [resolvable:$true] %s19_s16 }
   0x3   :  { %22 = dma.hbm_to_vmem [thread:$0]  %s18_s14, 512, %s20_s16, [#allocation5]  }
   0x4   :  { %126 = dma.done.wait [#allocation5], 512  }
   0x5   :  { %127 = vsyncadd [#allocation5], 4294966784  ;;  %v31_v0 = vld [vmem:[#allocation4] sm:$0xff]  ;;  %v32_v1 = vld [vmem:[#allocation4 + $0x8] sm:$0xff]  ;;  %v44_v7 = vstv %s165_s1  ;;  %v50_v12 = vstv %s166_s2  ;;  %s131_s20 = smov [#allocation7]   ;;  %s66_s23 = sshll.u32 %s167_s3, 4  ;;  %s67_s23 = int_to_ptr.hbm [resolvable:$true] %s66_s23 }
   0x6   :  { %v33_v2 = vld [vmem:[#allocation4 + $0x10] sm:$0xff]  ;;  %v35_v3 = vmax.f32 %v31_v0, 0.0  ;;  %v36_v4 = vmax.f32 %v32_v1, 0.0  ;;  %v34_v6 = vld [vmem:[#allocation4 + $0x18] sm:$0xff]  ;;  %s64_s21 = sshll.u32 %s131_s20, 4  ;;  %s65_s21 = int_to_ptr.vmem [resolvable:$true] %s64_s21 }
   0x7   :  { %v37_v5 = vmax.f32 %v33_v2, 0.0  ;;  %v38_v8 = vmax.f32 %v34_v6, 0.0 }
   0x8   :  { %v40_v9 = vmul.f32 %v35_v3, %v35_v3  ;;  %v41_v10 = vmul.f32 %v36_v4, %v36_v4 }
   0x9   :  { %v42_v11 = vmul.f32 %v37_v5, %v37_v5  ;;  %v43_v13 = vmul.f32 %v38_v8, %v38_v8 }
   0xa   :  { %v45_v14 = vmul.f32 %v44_v7, %v40_v9  ;;  %v46_v15 = vmul.f32 %v44_v7, %v41_v10 }
   0xb   :  { %v47_v16 = vmul.f32 %v44_v7, %v42_v11  ;;  %v48_v17 = vmul.f32 %v44_v7, %v43_v13 }
   0xc   :  { %v51_v18 = vadd.f32 %v50_v12, %v45_v14  ;;  %v52_v19 = vadd.f32 %v50_v12, %v46_v15 }
   0xd   :  { %v53_v20 = vadd.f32 %v50_v12, %v47_v16  ;;  %v54_v21 = vadd.f32 %v50_v12, %v48_v17 }
   0xe   :  { %55 = vst [vmem:[#allocation7] sm:$0xff] %v51_v18 }
   0xf   :  { %56 = vst [vmem:[#allocation7 + $0x8] sm:$0xff] %v52_v19 }
  0x10   :  { %57 = vst [vmem:[#allocation7 + $0x10] sm:$0xff] %v53_v20 }
  0x11   :  { %58 = vst [vmem:[#allocation7 + $0x18] sm:$0xff] %v54_v21 }
  0x12   :  { %69 = dma.vmem_to_hbm [thread:$0]  %s65_s21, 512, %s67_s23, [#allocation6]  }
  0x13   :  { %128 = dma.done.wait [#allocation6], 512  }
  0x14   :  { %129 = vsyncadd [#allocation6], 4294966784 }
  0x15   :  { %74 = vsyncpa [#allocation5], 1 }
  0x16   :  { %75 = vsyncpa [#allocation6], 1 }

</bundles_post_ra>
